<compile_context>
chip_gen: v7x
topology: tpu7x:2x2x1
jax: 0.10.0
libtpu: 0.0.40
codegen_flags: <defaults>
</compile_context>

<pallas_src>
import functools

import numpy as np
import jax
import jax.numpy as jnp
from jax.experimental import pallas as pl
from jax.experimental.pallas import tpu as pltpu

_MIB = 1024 * 1024


def _round_up(x, m):
    return ((x + m - 1) // m) * m


def _device_vmem_bytes():
    try:
        return int(pltpu.get_tpu_info().vmem_capacity_bytes)
    except Exception:
        return 64 * _MIB   # conservative fallback (v7x has the smallest VMEM)


def _pick_tk(K, tk_cap):
    """tk must divide the (possibly padded) K exactly — a ragged last K tile
    would accumulate garbage into the reduction. Returns (tk, pad_k)."""
    if K <= tk_cap:
        return K, 0
    for cand in range(tk_cap, 0, -128):          # multiples of 128, descending
        if K % cand == 0:
            return cand, 0
    Kp = _round_up(K, 128)                       # zero-pad K: exact (adds zeros)
    for cand in range(tk_cap, 0, -128):
        if Kp % cand == 0:
            return cand, Kp - K
    return 128, Kp - K                           # unreachable (128 | Kp)


def _pick_tiles(M, N, K, x_dtype, w_dtype, vmem_cap):
    xb = np.dtype(x_dtype).itemsize
    wb = np.dtype(w_dtype).itemsize
    pack = max(8, 32 // xb)                      # sublane packing: 8 f32, 16 bf16, 32 int8
    big_vmem = vmem_cap >= 96 * _MIB             # v5e / v6e (128 MiB VMEM)

    tm_cap = 512 if (big_vmem or xb <= 2) else 256
    tn_cap = 1024 if big_vmem else 512
    tk_cap = 1024 if xb <= 2 else 512
    budget = (100 if big_vmem else 48) * _MIB    # VMEM clamp per generation

    tk, pad_k = _pick_tk(K, tk_cap)
    k_grid = (K + pad_k) // tk
    tm = min(tm_cap, _round_up(M, pack))
    tn = N if N <= tn_cap else tn_cap

    def footprint(tm_, tn_):
        est = 2 * (tm_ * tk * xb + tk * tn_ * wb + tn_ * wb) + 2 * tm_ * tn_ * xb
        if k_grid > 1:
            est += tm_ * tn_ * 4                 # f32 accumulator scratch
        return est

    # Shrink to fit the per-generation VMEM budget (2x headroom on the
    # double-buffered estimate).
    while 2 * footprint(tm, tn) > budget and (tm > pack or tn > 128):
        if tm * tk * xb >= tk * tn * wb and tm > pack:
            tm = max(pack, _round_up(tm // 2, pack))
        elif tn > 128:
            tn = max(128, _round_up(tn // 2, 128))
        else:
            break

    # v7x has 2 TensorCores; make sure the parallel (M, N) grid has >= 2 tiles
    # so the second core isn't idle (irrelevant on v5e/v6e).
    if not big_vmem and pl.cdiv(M, tm) * pl.cdiv(N, tn) == 1:
        if M >= 2 * pack:
            tm = _round_up(pl.cdiv(M, 2), pack)
        elif N >= 256:
            tn = _round_up(pl.cdiv(N, 2), 128)

    vmem_limit = int(min(max(2 * footprint(tm, tn), 32 * _MIB), budget))
    return tm, tn, tk, pad_k, k_grid, vmem_limit


# ----------------------------------------------------------------------------
# Pallas kernels: tiled matmul + bias (the hot path of LinearProjection)
# ----------------------------------------------------------------------------
def _linear_bias_kernel_acc(x_ref, w_ref, b_ref, o_ref, acc_ref):
    # grid = (M tiles, N tiles, K tiles); K is the innermost reduction axis.
    k = pl.program_id(2)
    part = jnp.dot(x_ref[...], w_ref[...], preferred_element_type=jnp.float32)

    @pl.when(k == 0)
    def _():
        # First-iteration init: fold the bias in here — no zero-init pass of
        # the accumulator and no separate epilogue add.
        acc_ref[...] = part + b_ref[...].astype(jnp.float32)

    @pl.when(k > 0)
    def _():
        acc_ref[...] += part

    @pl.when(k == pl.num_programs(2) - 1)
    def _():
        o_ref[...] = acc_ref[...].astype(o_ref.dtype)


def _linear_bias_kernel_noacc(x_ref, w_ref, b_ref, o_ref):
    # Single-K-block case: no scratch, direct lane-dense store.
    o_ref[...] = (jnp.dot(x_ref[...], w_ref[...],
                          preferred_element_type=jnp.float32)
                  + b_ref[...].astype(jnp.float32)).astype(o_ref.dtype)


def linear_pallas(x2d: jax.Array, w: jax.Array, b: jax.Array) -> jax.Array:
    """out = x2d @ w + b   (x2d: (M, K), w: (K, N), b: (N,))."""
    M, K = x2d.shape
    K2, N = w.shape
    assert K2 == K and b.shape == (N,)

    tm, tn, tk, pad_k, k_grid, vmem_limit = _pick_tiles(
        M, N, K, x2d.dtype, w.dtype, _device_vmem_bytes())

    if pad_k:
        # Zero-padding the reduction dim is exact (zero contributions) and
        # keeps the "tk divides K" invariant for ragged K.
        x2d = jnp.pad(x2d, ((0, 0), (0, pad_k)))
        w = jnp.pad(w, ((0, pad_k), (0, 0)))
    Kp = K + pad_k

    bias2d = b.reshape(1, N)
    m_grid = pl.cdiv(M, tm)
    n_grid = pl.cdiv(N, tn)
    out_shape = jax.ShapeDtypeStruct((M, N), x2d.dtype)

    if k_grid == 1:
        # Weight-stationary: N tiles outer, M tiles inner -> weight/bias block
        # indices are constant along the innermost grid axis, so Pallas skips
        # their re-DMA while streaming activation rows.
        return pl.pallas_call(
            _linear_bias_kernel_noacc,
            out_shape=out_shape,
            grid_spec=pltpu.PrefetchScalarGridSpec(
                num_scalar_prefetch=0,
                grid=(n_grid, m_grid),
                in_specs=[
                    pl.BlockSpec((tm, Kp), lambda j, i: (i, 0)),   # activations
                    pl.BlockSpec((Kp, tn), lambda j, i: (0, j)),   # weights (resident)
                    pl.BlockSpec((1, tn), lambda j, i: (0, j)),    # bias (resident)
                ],
                out_specs=pl.BlockSpec((tm, tn), lambda j, i: (i, j)),
            ),
            compiler_params=pltpu.CompilerParams(
                dimension_semantics=("parallel", "parallel"),
                vmem_limit_bytes=vmem_limit),
        )(x2d, w, bias2d)

    return pl.pallas_call(
        _linear_bias_kernel_acc,
        out_shape=out_shape,
        grid_spec=pltpu.PrefetchScalarGridSpec(
            num_scalar_prefetch=0,
            grid=(m_grid, n_grid, k_grid),
            in_specs=[
                pl.BlockSpec((tm, tk), lambda i, j, k: (i, k)),    # x row tile
                pl.BlockSpec((tk, tn), lambda i, j, k: (k, j)),    # weight tile
                pl.BlockSpec((1, tn), lambda i, j, k: (0, j)),     # bias tile
            ],
            out_specs=pl.BlockSpec((tm, tn), lambda i, j, k: (i, j)),
            scratch_shapes=[pltpu.VMEM((tm, tn), jnp.float32)],
        ),
        compiler_params=pltpu.CompilerParams(
            dimension_semantics=("parallel", "parallel", "arbitrary"),
            vmem_limit_bytes=vmem_limit),
    )(x2d, w, bias2d)


# ----------------------------------------------------------------------------
# LinearProjection forward (glue in plain JAX around the Pallas matmul)
# ----------------------------------------------------------------------------
def linear_projection_forward(x, params, heads: int, attn_kv=None,
                              split_heads: bool = True):
    """Mirrors LinearProjection.forward: returns (q, k, v), each
    (b, heads, L, c // heads).  With split_heads=False, returns lane-dense
    (b, L, heads * c // heads) slices (no post-kernel transpose) for fused
    downstream kernels.  Requires inner_channels == channels, like the
    reference reshape."""
    b_, n, c = x.shape
    head_dim = c // heads                 # matches the PyTorch reshape
    inner = heads * head_dim

    if attn_kv is None:
        # Self-attention: single fused matmul (B*N, C) @ (C, 3*inner).
        qkv2d = linear_pallas(x.reshape(b_ * n, c),
                              params["w_qkv"], params["b_qkv"])
        if not split_heads:
            q = qkv2d[:, :inner].reshape(b_, n, inner)
            k = qkv2d[:, inner:2 * inner].reshape(b_, n, inner)
            v = qkv2d[:, 2 * inner:].reshape(b_, n, inner)
            return q, k, v
        # Column layout is [q | k | v]  ->  (3, b, heads, n, head_dim)
        qkv = qkv2d.reshape(b_, n, 3, heads, head_dim).transpose(2, 0, 3, 1, 4)
        return qkv[0], qkv[1], qkv[2]

    # Cross-attention: attn_kv is (n_kv, c); project it ONCE (the reference
    # repeats the same matmul b_ times) and broadcast lazily over the batch.
    n_kv = attn_kv.shape[0]
    q2d = linear_pallas(x.reshape(b_ * n, c), params["wq"], params["bq"])
    kv2d = linear_pallas(attn_kv, params["wkv"], params["bkv"])   # (n_kv, 2*inner)

    if not split_heads:
        q = q2d.reshape(b_, n, inner)
        k = jnp.broadcast_to(kv2d[None, :, :inner], (b_, n_kv, inner))
        v = jnp.broadcast_to(kv2d[None, :, inner:], (b_, n_kv, inner))
        return q, k, v

    q = q2d.reshape(b_, n, 1, heads, head_dim).transpose(2, 0, 3, 1, 4)[0]
    kv = kv2d.reshape(1, n_kv, 2, heads, head_dim).transpose(2, 0, 3, 1, 4)
    # broadcast_to keeps the module's (b, heads, n_kv, hd) contract; XLA keeps
    # it lazy unless the consumer materializes it.
    kv = jnp.broadcast_to(kv, (2, b_, heads, n_kv, head_dim))
    return q, kv[0], kv[1]


def init_params(key, channels: int, heads: int, head_channels: int,
                dtype=jnp.float32):
    inner = heads * head_channels
    k1, k2, k3, k4 = jax.random.split(key, 4)
    scale = 1.0 / jnp.sqrt(channels)
    wq = jax.random.normal(k1, (channels, inner), dtype) * scale
    bq = jax.random.normal(k2, (inner,), dtype) * scale
    wkv = jax.random.normal(k3, (channels, 2 * inner), dtype) * scale
    bkv = jax.random.normal(k4, (2 * inner,), dtype) * scale
    return {
        "wq": wq, "bq": bq, "wkv": wkv, "bkv": bkv,
        # Fused (C, 3*inner) weights, concatenated ONCE here so the
        # self-attention path is one Pallas matmul with no per-call concat.
        "w_qkv": jnp.concatenate([wq, wkv], axis=1),
        "b_qkv": jnp.concatenate([bq, bkv]),
    }


if __name__ == "__main__":
    # Small, module-consistent shapes (inner_channels == channels = 128 so the
    # fused output width 3*inner = 384 is a multiple of 128: lane-dense stores).
    batch, seq, heads, head_channels = 2, 8, 4, 32
    channels = heads * head_channels            # 128
    n_kv = 6

    key = jax.random.PRNGKey(0)
    kx, kkv, kp, kw1, kw2, kw3 = jax.random.split(key, 6)
    x = jax.random.normal(kx, (batch, seq, channels), jnp.float32)
    akv = jax.random.normal(kkv, (n_kv, channels), jnp.float32)
    params = init_params(kp, channels, heads, head_channels)

    fwd = jax.jit(functools.partial(linear_projection_forward, heads=heads))
    fwd_flat = jax.jit(functools.partial(
        linear_projection_forward, heads=heads, split_heads=False))

    # Pure-JAX reference mirroring the PyTorch forward exactly.
    def reference(x, params, attn_kv=None):
        b_, n, c = x.shape
        hd = c // heads
        kv_in = x if attn_kv is None else jnp.broadcast_to(
            attn_kv[None], (b_,) + attn_kv.shape)
        n_k = kv_in.shape[1]
        q2d = x.reshape(b_ * n, c) @ params["wq"] + params["bq"]
        kv2d = kv_in.reshape(b_ * n_k, c) @ params["wkv"] + params["bkv"]
        q = q2d.reshape(b_, n, 1, heads, hd).transpose(2, 0, 3, 1, 4)[0]
        kv = kv2d.reshape(b_, n_k, 2, heads, hd).transpose(2, 0, 3, 1, 4)
        return q, kv[0], kv[1]

    hd = channels // heads

    # --- self-attention (fused q/kv projection), f32, module-shaped outputs ---
    q, k, v = fwd(x, params)
    jax.block_until_ready((q, k, v))
    qr, kr, vr = reference(x, params)
    assert q.shape == (batch, heads, seq, hd)
    assert k.shape == (batch, heads, seq, hd)
    assert v.shape == (batch, heads, seq, hd)
    assert jnp.allclose(q, qr, atol=1e-3, rtol=1e-3)
    assert jnp.allclose(k, kr, atol=1e-3, rtol=1e-3)
    assert jnp.allclose(v, vr, atol=1e-3, rtol=1e-3)

    # --- lane-dense (B, N, inner) layout: no head transpose / extra HBM pass ---
    qf, kf, vf = fwd_flat(x, params)
    jax.block_until_ready((qf, kf, vf))
    assert qf.shape == (batch, seq, channels)
    assert jnp.allclose(
        qf, qr.transpose(0, 2, 1, 3).reshape(batch, seq, channels),
        atol=1e-3, rtol=1e-3)

    # --- cross-attention (kv projected once on attn_kv, broadcast over batch) ---
    q2, k2, v2 = fwd(x, params, attn_kv=akv)
    jax.block_until_ready((q2, k2, v2))
    qr2, kr2, vr2 = reference(x, params, attn_kv=akv)
    assert k2.shape == (batch, heads, n_kv, hd)
    assert jnp.allclose(q2, qr2, atol=1e-3, rtol=1e-3)
    assert jnp.allclose(k2, kr2, atol=1e-3, rtol=1e-3)
    assert jnp.allclose(v2, vr2, atol=1e-3, rtol=1e-3)

    # --- bf16 fast-MXU path (f32 accumulation + fused f32 bias in kernel) ---
    params_bf16 = jax.tree_util.tree_map(
        lambda a: a.astype(jnp.bfloat16), params)
    qb, kb, vb = fwd(x.astype(jnp.bfloat16), params_bf16)
    jax.block_until_ready((qb, kb, vb))
    assert float(jnp.max(jnp.abs(qb.astype(jnp.float32) - qr))) < 0.25
    assert float(jnp.max(jnp.abs(vb.astype(jnp.float32) - vr))) < 0.25

    # --- K-tiled accumulator path (K > one block): exercises the reduction kernel ---
    Mx, Kx, Nx = 32, 2048, 256
    wx = jax.random.normal(kw1, (Kx, Nx), jnp.float32) / jnp.sqrt(Kx)
    bx = jax.random.normal(kw2, (Nx,), jnp.float32)
    xx = jax.random.normal(kw3, (Mx, Kx), jnp.float32)
    yy = jax.jit(linear_pallas)(xx, wx, bx)
    jax.block_until_ready(yy)
    assert jnp.allclose(yy, xx @ wx + bx, atol=5e-2, rtol=5e-3)

    print("KERNEL_OK")
</pallas_src>

<mosaic_0001>
module attributes {stable_mosaic.version = 11 : i64} {
  func.func @_linear_bias_kernel_noacc(%arg0: i32, %arg1: i32, %arg2: memref<8x128xf32, #tpu.memory_space<vmem>>, %arg3: memref<128x384xf32, #tpu.memory_space<vmem>>, %arg4: memref<1x384xf32, #tpu.memory_space<vmem>>, %arg5: memref<8x384xf32, #tpu.memory_space<vmem>>) attributes {dimension_semantics = [#tpu.dimension_semantics<parallel>, #tpu.dimension_semantics<parallel>], iteration_bounds = array<i64: 1, 2>, scalar_prefetch = 0 : i64, scratch_operands = 0 : i64, tpu.core_type = #tpu.core_type<tc>, window_params = [{transform_indices = @transform_0, window_bounds = array<i64: 8, 128>}, {transform_indices = @transform_1, window_bounds = array<i64: 128, 384>}, {transform_indices = @transform_2, window_bounds = array<i64: 1, 384>}, {transform_indices = @transform_3, window_bounds = array<i64: 8, 384>}]} {
    %c0 = arith.constant 0 : index
    %c0_0 = arith.constant 0 : index
    %0 = vector.load %arg2[%c0, %c0_0] : memref<8x128xf32, #tpu.memory_space<vmem>>, vector<8x128xf32>
    %c0_1 = arith.constant 0 : index
    %c0_2 = arith.constant 0 : index
    %1 = vector.load %arg3[%c0_1, %c0_2] : memref<128x384xf32, #tpu.memory_space<vmem>>, vector<128x384xf32>
    %cst = arith.constant dense<0.000000e+00> : vector<8x384xf32>
    %2 = tpu.matmul %0, %1, %cst {dimension_numbers = #tpu.dot_dimension_numbers<[1], [0], [0], [1], [0, 0, 1, 1], [], []>} : vector<8x128xf32>, vector<128x384xf32>, vector<8x384xf32> -> vector<8x384xf32>
    %c0_3 = arith.constant 0 : index
    %c0_4 = arith.constant 0 : index
    %3 = vector.load %arg4[%c0_3, %c0_4] : memref<1x384xf32, #tpu.memory_space<vmem>>, vector<1x384xf32>
    %4 = vector.broadcast %3 : vector<1x384xf32> to vector<8x384xf32>
    %5 = arith.addf %2, %4 : vector<8x384xf32>
    %c0_5 = arith.constant 0 : index
    %c0_6 = arith.constant 0 : index
    %6 = vector.load %arg5[%c0_5, %c0_6] : memref<8x384xf32, #tpu.memory_space<vmem>>, vector<8x384xf32>
    tpu.vector_store %arg5[%c0_5, %c0_6], %5 {strides = array<i32>} : memref<8x384xf32, #tpu.memory_space<vmem>>, vector<8x384xf32>,
    return
  }
  func.func @transform_0(%arg0: i32, %arg1: i32) -> (i32, i32) {
    %c0_i32 = arith.constant 0 : i32
    %c0_i32_0 = arith.constant 0 : i32
    return %arg1, %c0_i32 : i32, i32
  }
  func.func @transform_1(%arg0: i32, %arg1: i32) -> (i32, i32) {
    %c0_i32 = arith.constant 0 : i32
    %c0_i32_0 = arith.constant 0 : i32
    return %c0_i32, %arg0 : i32, i32
  }
  func.func @transform_2(%arg0: i32, %arg1: i32) -> (i32, i32) {
    %c0_i32 = arith.constant 0 : i32
    %c0_i32_0 = arith.constant 0 : i32
    return %c0_i32, %arg0 : i32, i32
  }
  func.func @transform_3(%arg0: i32, %arg1: i32) -> (i32, i32) {
    %c0_i32 = arith.constant 0 : i32
    return %arg1, %arg0 : i32, i32
  }
}

</mosaic_0001>

<bundles_post_ra>
// kernel: linear_projection_forward.1
= control target key start
LH: loop header
LB: loop body
LE: loop exit
PB: predicated region body
PF: predicated region fallthrough
CT: control target
= control target key end

     0   :  { %8 = vsyncpa [#allocation3], 0  ;;  %s1086_s0 = inlined_call_operand.hbm [shape: f32[16,128], index: 0, kind: input, shape index: {}]   ;;  %s1087_s1 = inlined_call_operand.hbm [shape: f32[128,384], index: 1, kind: input, shape index: {}]   ;;  %s1088_s2 = inlined_call_operand.vmem [shape: f32[1,384], index: 2, kind: input, shape index: {}]   ;;  %s1089_s3 = inlined_call_operand.vmem [shape: f32[16,384], index: 3, kind: output, shape index: {}]  }
   0x1   :  { %10 = vsyncpa [#allocation3 + $0x1], 0 }
   0x2   :  { %11 = vsyncpa [#allocation5], 0  ;;  %s915_s12 = smov 0   ;;  %s917_s13 = smov 0  }
   0x3   :  { %s919_s14 = smov 0   ;;  %s921_s15 = smov 0  }
   0x4   :  { %s923_s16 = smov 0   ;;  %s925_s17 = smov 0  }
   0x5 LB: > { %s580_s18 = sadd.s32 4294967295, %s886_s17   ;;  %p49_p0 = scmp.ne.s32.totalorder %s870_s13, %s866_s12  ;;  %s886_s17 = sphi %s925_s17, %s17_s17   ;;  %s882_s16 = sphi %s923_s16, %s1106_s16   ;;  %s878_s15 = sphi %s921_s15, %s1105_s15   ;;  %s874_s14 = sphi %s919_s14, %s1104_s14   ;;  %s870_s13 = sphi %s917_s13, %s1103_s13   ;;  %s866_s12 = sphi %s915_s12, %s1102_s12  }
   0x6   : > { %p945_p1 = scmp.eq.s32.totalorder %s580_s18, 0  ;;  %p582_p2 = scmp.ge.s32.totalorder %s886_s17, 1 }
   0x7   : > { %p140_p3 = scmp.lt.s32.totalorder %s886_s17, 3  ;;  %s888_s22 = smov [#allocation4]  }
   0x8   : > { %s1094_s19 = scalar_select %p945_p1, 1, 0 }
   0x9   : > { %p953_p4 = por %p945_p1, %p49_p0  ;;  %p957_p5 = pnand %p582_p2, %p140_p3 }
   0xa   : > { %s155_s23 = sshll.u32 %s888_s22, 4  ;;  %s26_s25 = sadd.s32 1, %s882_s16  ;;  %s156_s23 = int_to_ptr.vmem [resolvable:$true] %s155_s23 }
   0xb   : > { %s1095_s20 = scalar_select %p953_p4, 1, 0 }
   0xc   : > { %s1096_s21 = scalar_select %p957_p5, 1, 0 }
   0xd   : > { %p709_p6 = pneg %p957_p5  ;;  %s774_s28 = scalar_lea.hbm %s1087_s1, 6144 }
   0xe   : > { %p775_p8 = scmp.ne.s32.totalorder %s1087_s1, %s774_s28  ;;  %p781_p12 = scmp.lt.u32.totalorder %s774_s28, %s1087_s1 }
   0xf   : > { %p965_p7 = pnand %p709_p6, %p945_p1 }
  0x11   : > { %p776_p9 = pneg %p965_p7 }
  0x13   : > { %p777_p10 = pnand %p776_p9, %p775_p8 }
  0x15   : > { %p778_p11 = pneg %p777_p10 }
  0x17   : > { %p783_p13 = pnand %p781_p12, %p778_p11 }
  0x19   : > { %786 = shalt.err (!%p783_p13)
}
  0x1a   : > { %s787_s6 = scalar_lea.vmem %s156_s23, 6144  ;;  %p795_p6 = scmp.lt.s32.totalorder %s156_s23, %s156_s23 }
  0x1b   : > { %p788_p0 = scmp.ne.s32.totalorder %s156_s23, %s787_s6  ;;  %p796_p1 = scmp.lt.s32.totalorder %s787_s6, %s787_s6 }
  0x1d   : > { %p790_p2 = pnand %p788_p0, %p776_p9  ;;  %p797_p4 = por %p796_p1, %p795_p6 }
  0x1f   : > { %p791_p3 = pneg %p790_p2 }
  0x21   : > { %p798_p5 = pnand %p797_p4, %p791_p3 }
  0x23   : > { %801 = shalt.err (!%p798_p5)
}
  0x24   : > { %s889_s7 = smov 384   ;;  %s890_s8 = smov 24  }
  0x25   : > { %712 = dma.hbm_to_vmem [thread:$0]  (!%p965_p7), %s1087_s1, 6144, %s156_s23, [#allocation5], %s889_s7, %s889_s7, %s890_s8  }
  0x26   : > { %p27_p1 = scmp.ge.s32.totalorder %s26_s25, 2  ;;  %s36_s11 = sadd.s32 1, %s874_s14 }
  0x27   : > { %p43_p4 = scmp.ne.s32.totalorder %s874_s14, %s870_s13  ;;  %p44_p5 = scmp.eq.s32.totalorder %s886_s17, 0 }
  0x28   : > { %s1108_s25 = smov (%p27_p1, %s26_s25), 0  ;;  %p718_p9 = scmp.lt.s32.totalorder %s886_s17, 2 }
  0x29   : > { %p45_p8 = por %p44_p5, %p43_p4  ;;  %s33_s12 = ssub.s32 %s882_s16, %s1108_s25 }
  0x2a   : > { %s177_s18 = sand.u32 1, %s874_s14   ;;  %p34_p10 = scmp.eq.s32.totalorder %s33_s12, 0 }
  0x2b   : > { %s586_s22 = sshll.u32 %s177_s18, 3  ;;  %s587_s26 = sshll.u32 %s882_s16, 7 }
  0x2c   : > { %s998_s27 = scalar_select %p34_p10, %s874_s14, %s36_s11  }
  0x2d   : > { %s1003_s23 = scalar_lea.hbm %s1086_s0, %s587_s26  ;;  %s181_s29 = scalar_lea.vmem [#allocation2], %s586_s22 }
  0x2e   : > { %s188_s30 = sshll.u32 %s181_s29, 4  ;;  %p1005_p7 = pnand %p718_p9, %p45_p8  ;;  %s1009_s30 = int_to_ptr.vmem [resolvable:$true] %s188_s30 }
  0x2f   : > { %s178_s5 = scalar_lea.sflag [#allocation3], %s177_s18  ;;  %s802_s6 = scalar_lea.hbm %s1003_s23, 128 }
  0x30   : > { %p803_p11 = scmp.ne.s32.totalorder %s1003_s23, %s802_s6  ;;  %p804_p12 = pneg %p1005_p7 }
  0x31   : > { %s807_s9 = scalar_lea.hbm %s1086_s0, 256  ;;  %p808_p2 = scmp.lt.u32.totalorder %s1003_s23, %s1086_s0 }
  0x32   : > { %p805_p13 = pnand %p804_p12, %p803_p11  ;;  %p809_p3 = scmp.lt.u32.totalorder %s807_s9, %s802_s6 }
  0x33   : > { %p811_p1 = scmp.lt.u32.totalorder %s802_s6, %s1003_s23 }
  0x34   : > { %p806_p0 = pneg %p805_p13  ;;  %p810_p6 = por %p809_p3, %p808_p2 }
  0x36   : > { %p812_p4 = por %p811_p1, %p810_p6 }
  0x38   : > { %p813_p5 = pnand %p812_p4, %p806_p0 }
  0x3a   : > { %816 = shalt.err (!%p813_p5)
}
  0x3b   : > { %s817_s12 = scalar_lea.vmem %s1009_s30, 128  ;;  %s891_s18 = smov [#allocation2]  }
  0x3c   : > { %p818_p8 = scmp.ne.s32.totalorder %s1009_s30, %s817_s12  ;;  %s822_s22 = sshll.u32 %s891_s18, 4  ;;  %s823_s22 = int_to_ptr.vmem [resolvable:$false] %s822_s22 }
  0x3d   : > { %s824_s26 = scalar_lea.vmem %s823_s22, 256  ;;  %p825_p11 = scmp.lt.s32.totalorder %s1009_s30, %s823_s22 }
  0x3e   : > { %p820_p9 = pnand %p818_p8, %p804_p12  ;;  %p826_p13 = scmp.lt.s32.totalorder %s824_s26, %s817_s12 }
  0x40   : > { %p821_p10 = pneg %p820_p9  ;;  %p827_p2 = por %p826_p13, %p825_p11 }
  0x42   : > { %p828_p3 = pnand %p827_p2, %p821_p10 }
  0x44   : > { %831 = shalt.err (!%p828_p3)
}
  0x45   : > { %716 = dma.hbm_to_vmem [thread:$0]  (!%p1005_p7), %s1003_s23, 128, %s1009_s30, %s178_s5  }
  0x46   : > { %p1099_p0 = scmp.ne.s32.totalorder %s1096_s21, 0 }
  0x47   : > { %s199_s24 = sand.u32 (!%p1099_p0), 1, %s870_s13   ;;  %p1100_p12 = scmp.ne.s32.totalorder (!%p1099_p0), %s1095_s20, 0 }
  0x48   : > { %197 = sbr.rel (%p1099_p0) target bundleno = 335 (0x14f), region = 32  ;;  %s1039_s28 = sshll.u32 (!%p1099_p0), %s199_s24, 3 }
  0x49   : > { %s200_s29 = scalar_lea.sflag (!%p1099_p0), [#allocation3], %s199_s24  ;;  %s203_s6 = scalar_lea.vmem (!%p1099_p0), [#allocation2], %s1039_s28 }
  0x4f   : > { %857 = dma.done.wait (%p1100_p12), %s200_s29, 128  }
  0x50   : > { %859 = vsyncadd (%p1100_p12), %s200_s29, 4294967168  ;;  %p1101_p6 = scmp.ne.s32.totalorder %s1094_s19, 0 }
  0x52   : > { %861 = dma.done.wait (%p1101_p6), [#allocation5], 6144  }
  0x53   : > { %863 = vsyncadd (%p1101_p6), [#allocation5], 4294961152  ;;  %v892_v0 = vmov 0.0|0.0   ;;  %v893_v1 = vmov 0.0   ;;  %vm894_vm0 = vmmov 0   ;;  %v256_v2 = vld [vmem:[#allocation4 + $0x8] sm:$0xff] }
  0x54   : > { %678 = vmatprep.subr.bf16.mxu1 %v892_v0  ;;  %384 = vmatprep.mubr.f32.mxu0 %v893_v1  ;;  %v259_v3 = vld [vmem:[#allocation4 + $0x20] sm:$0xff]  ;;  %v258_v6 = vld [vmem:[#allocation4 + $0x18] sm:$0xff]  ;;  %v257_v7 = vld [vmem:[#allocation4 + $0x10] sm:$0xff]  ;;  %p245_p7 = scmp.lt.s32.totalorder %s878_s15, 1 }
  0x55   : > { %643 = vmatprep.mubr.msk.f32.mxu1 %vm894_vm0, %v893_v1  ;;  %v255_v4 = vld [vmem:[#allocation4] sm:$0xff]  ;;  %v646_v5 = vpack.c.bf16 %v259_v3, %v256_v2  ;;  %v260_v8 = vld [vmem:[#allocation4 + $0x28] sm:$0xff]  ;;  %v262_v11 = vld [vmem:[#allocation4 + $0x38] sm:$0xff] }
  0x56   : > { %v648_v9 = vpack.c.bf16 %v258_v6, %v255_v4  ;;  %v679_v10 = vpack.c.bf16 %v260_v8, %v257_v7  ;;  %v265_v12 = vld [vmem:[#allocation4 + $0x50] sm:$0xff]  ;;  %v264_v15 = vld [vmem:[#allocation4 + $0x48] sm:$0xff]  ;;  %v263_v16 = vld [vmem:[#allocation4 + $0x40] sm:$0xff]  ;;  %s1110_s15 = smov (!%p245_p7, %s878_s15), 1 }
  0x57   : > { %v261_v13 = vld [vmem:[#allocation4 + $0x30] sm:$0xff]  ;;  %647 = vmatprep.subr.bf16.mxu0 %v646_v5  ;;  %v650_v14 = vpack.c.bf16 %v265_v12, %v262_v11  ;;  %v266_v17 = vld [vmem:[#allocation4 + $0x58] sm:$0xff]  ;;  %v268_v20 = vld [vmem:[#allocation4 + $0x68] sm:$0xff]  ;;  %v305_v12 = vlaneseq  ;;  %s702_s21 = smul.u32 24, %s1110_s15 }
  0x58   : > { %649 = vmatpush1.bf16.msra.mxu0 %v648_v9  ;;  %680 = vmatpush3.bf16.msra.mxu1 %v679_v10  ;;  %v652_v18 = vpack.c.bf16 %v264_v15, %v261_v13  ;;  %v682_v19 = vpack.c.bf16 %v266_v17, %v263_v16  ;;  %v271_v21 = vld [vmem:[#allocation4 + $0x80] sm:$0xff]  ;;  %v270_v24 = vld [vmem:[#allocation4 + $0x78] sm:$0xff]  ;;  %v269_v25 = vld [vmem:[#allocation4 + $0x70] sm:$0xff] }
  0x59   : > { %v267_v22 = vld [vmem:[#allocation4 + $0x60] sm:$0xff]  ;;  %651 = vmatprep.subr.bf16.mxu0 %v650_v14  ;;  %681 = vmatprep.subr.bf16.mxu1 %v892_v0  ;;  %v654_v23 = vpack.c.bf16 %v271_v21, %v268_v20  ;;  %v272_v26 = vld [vmem:[#allocation4 + $0x88] sm:$0xff]  ;;  %v274_v27 = vld [vmem:[#allocation4 + $0x98] sm:$0xff]  ;;  %v306_v13 = vshrl.u32 %v305_v12, 7  ;;  %s252_s4 = scalar_lea.vmem %s1089_s3, %s702_s21 }
  0x5a   : > { %v277_v28 = vld [vmem:[#allocation4 + $0xb0] sm:$0xff]  ;;  %v656_v29 = vpack.c.bf16 %v270_v24, %v267_v22  ;;  %v685_v30 = vpack.c.bf16 %v272_v26, %v269_v25  ;;  %v276_v33 = vld [vmem:[#allocation4 + $0xa8] sm:$0xff]  ;;  %v275_v34 = vld [vmem:[#allocation4 + $0xa0] sm:$0xff] }
  0x5b   : > { %v273_v31 = vld [vmem:[#allocation4 + $0x90] sm:$0xff]  ;;  %v658_v32 = vpack.c.bf16 %v277_v28, %v274_v27  ;;  %v278_v35 = vld [vmem:[#allocation4 + $0xb8] sm:$0xff]  ;;  %v280_v36 = vld [vmem:[#allocation4 + $0xc8] sm:$0xff]  ;;  %v307_v14 = vsub.s32 0, %v306_v13  ;;  %v315_v15 = vsub.s32 2, %v306_v13  ;;  %v311_v17 = vsub.s32 1, %v306_v13 }
  0x5c   : > { %653 = vmatpush1.bf16.msra.mxu0 %v652_v18  ;;  %683 = vmatpush3.bf16.msra.mxu1 %v682_v19  ;;  %v283_v37 = vld [vmem:[#allocation4 + $0xe0] sm:$0xff]  ;;  %v660_v38 = vpack.c.bf16 %v276_v33, %v273_v31  ;;  %v688_v39 = vpack.c.bf16 %v278_v35, %v275_v34  ;;  %v282_v42 = vld [vmem:[#allocation4 + $0xd8] sm:$0xff]  ;;  %v281_v43 = vld [vmem:[#allocation4 + $0xd0] sm:$0xff] }
  0x5d   : > { %655 = vmatprep.subr.bf16.mxu0 %v654_v23  ;;  %684 = vmatprep.subr.bf16.mxu1 %v892_v0  ;;  %v279_v40 = vld [vmem:[#allocation4 + $0xc0] sm:$0xff]  ;;  %v662_v41 = vpack.c.bf16 %v283_v37, %v280_v36  ;;  %v284_v44 = vld [vmem:[#allocation4 + $0xe8] sm:$0xff]  ;;  %v286_v45 = vld [vmem:[#allocation4 + $0xf8] sm:$0xff] }
  0x5e   : > { %v289_v46 = vld [vmem:[#allocation4 + $0x110] sm:$0xff]  ;;  %v664_v47 = vpack.c.bf16 %v282_v42, %v279_v40  ;;  %v691_v48 = vpack.c.bf16 %v284_v44, %v281_v43  ;;  %v288_v51 = vld [vmem:[#allocation4 + $0x108] sm:$0xff]  ;;  %v287_v52 = vld [vmem:[#allocation4 + $0x100] sm:$0xff] }
  0x5f   : > { %v285_v49 = vld [vmem:[#allocation4 + $0xf0] sm:$0xff]  ;;  %v666_v50 = vpack.c.bf16 %v289_v46, %v286_v45  ;;  %v290_v53 = vld [vmem:[#allocation4 + $0x118] sm:$0xff]  ;;  %v292_v54 = vld [vmem:[#allocation4 + $0x128] sm:$0xff] }
  0x60   : > { %657 = vmatpush1.bf16.msra.mxu0 %v656_v29  ;;  %686 = vmatpush3.bf16.msra.mxu1 %v685_v30  ;;  %v295_v55 = vld [vmem:[#allocation4 + $0x140] sm:$0xff]  ;;  %v668_v56 = vpack.c.bf16 %v288_v51, %v285_v49  ;;  %v694_v57 = vpack.c.bf16 %v290_v53, %v287_v52  ;;  %v294_v60 = vld [vmem:[#allocation4 + $0x138] sm:$0xff]  ;;  %v293_v61 = vld [vmem:[#allocation4 + $0x130] sm:$0xff] }
  0x61   : > { %659 = vmatprep.subr.bf16.mxu0 %v658_v32  ;;  %687 = vmatprep.subr.bf16.mxu1 %v892_v0  ;;  %v291_v58 = vld [vmem:[#allocation4 + $0x120] sm:$0xff]  ;;  %v670_v59 = vpack.c.bf16 %v295_v55, %v292_v54  ;;  %v296_v62 = vld [vmem:[#allocation4 + $0x148] sm:$0xff]  ;;  %v298_v63 = vld [vmem:[#allocation4 + $0x158] sm:$0xff] }
  0x62   : > { %v301_v1 = vld [vmem:[#allocation4 + $0x170] sm:$0xff]  ;;  %v672_v2 = vpack.c.bf16 %v294_v60, %v291_v58  ;;  %v697_v3 = vpack.c.bf16 %v296_v62, %v293_v61  ;;  %v300_v6 = vld [vmem:[#allocation4 + $0x168] sm:$0xff]  ;;  %v299_v7 = vld [vmem:[#allocation4 + $0x160] sm:$0xff] }
  0x63   : > { %v297_v4 = vld [vmem:[#allocation4 + $0x150] sm:$0xff]  ;;  %v674_v5 = vpack.c.bf16 %v301_v1, %v298_v63  ;;  %v302_v8 = vld [vmem:[#allocation4 + $0x178] sm:$0xff] }
  0x64   : > { %661 = vmatpush1.bf16.msra.mxu0 %v660_v38  ;;  %689 = vmatpush3.bf16.msra.mxu1 %v688_v39  ;;  %v676_v9 = vpack.c.bf16 %v300_v6, %v297_v4  ;;  %v700_v10 = vpack.c.bf16 %v302_v8, %v299_v7  ;;  %v254_v11 = vld [vmem:[%s203_s6] sm:$0xff] }
  0x65   : > { %663 = vmatprep.subr.bf16.mxu0 %v662_v41  ;;  %690 = vmatprep.subr.bf16.mxu1 %v892_v0  ;;  %v303_v16 = vld [vmem:[%s1088_s2] sm:$0x7] }
  0x66   : > { %v308_v18 = vrot.slane %v303_v16, %v307_v14  ;;  %v312_v19 = vrot.slane %v303_v16, %v311_v17 }
  0x68   : > { %665 = vmatpush1.bf16.msra.mxu0 %v664_v47  ;;  %692 = vmatpush3.bf16.msra.mxu1 %v691_v48 }
  0x69   : > { %667 = vmatprep.subr.bf16.mxu0 %v666_v50  ;;  %693 = vmatprep.subr.bf16.mxu1 %v892_v0 }
  0x6c   : > { %669 = vmatpush1.bf16.msra.mxu0 %v668_v56  ;;  %695 = vmatpush3.bf16.msra.mxu1 %v694_v57 }
  0x6d   : > { %671 = vmatprep.subr.bf16.mxu0 %v670_v59  ;;  %696 = vmatprep.subr.bf16.mxu1 %v892_v0 }
  0x70   : > { %673 = vmatpush1.bf16.msra.mxu0 %v672_v2  ;;  %698 = vmatpush3.bf16.msra.mxu1 %v697_v3 }
  0x71   : > { %675 = vmatprep.subr.bf16.mxu0 %v674_v5  ;;  %699 = vmatprep.subr.bf16.mxu1 %v892_v0  ;;  %v316_v0 = vrot.slane %v303_v16, %v315_v15 }
  0x74   : > { %677 = vmatpush1.bf16.msra.mxu0 %v676_v9  ;;  %701 = vmatpush3.bf16.msra.mxu1 %v700_v10 }
  0x77   : > { %385 = vmatmul.mubr.f32.vlgmr.msra.gmra.mrb[0].mxu0 %v254_v11  ;;  %644 = vmatmul.mubr.f32.vlgmr.msra.gmra.mrb[0].mxu1 %v254_v11 }
 0x14a   : > { %v386_v20 = vpop.f32.mrb[0].mxu0  ;;  %v457_v21 = vpop.f32.mrb[0].mxu1 }
 0x14b   : > { %v387_v22 = vadd.f32 %v386_v20, %v308_v18  ;;  %v458_v23 = vadd.f32 %v457_v21, %v316_v0  ;;  %v388_v24 = vpop.f32.mrb[1].mxu0  ;;  %v645_v25 = vpop.f32.mrb[1].mxu1 }
 0x14c   : > { %v389_v26 = vadd.f32 %v388_v24, %v312_v19 }
 0x14d   : > { %461 = vst [vmem:[%s252_s4] sm:$0xff] %v387_v22  ;;  %463 = vst [vmem:[%s252_s4 + $0x10] sm:$0xff] %v458_v23 }
 0x14e   : > { %462 = vst [vmem:[%s252_s4 + $0x8] sm:$0xff] %v389_v26 }
 0x14f PF: > { %s17_s17 = sadd.s32 1, %s886_s17   ;;  %s1102_s12 = smov %s870_s13 }
 0x150   : > { %p14_p1 = scmp.ge.s32.totalorder %s17_s17, 4   ;;  %s1103_s13 = smov %s874_s14 }
 0x151   : > { %s1104_s14 = smov %s998_s27  ;;  %s1105_s15 = smov %s882_s16 }
 0x152   : > { %s1106_s16 = smov %s1108_s25  ;;  %16 = sbr.rel (!%p14_p1) target bundleno = 5 (0x5), region = 80 }
 0x159   :  { %494 = vsyncpa [#allocation3], 1 }
 0x15a   :  { %496 = vsyncpa [#allocation3 + $0x1], 1 }
 0x15b   :  { %497 = vsyncpa [#allocation5], 1 }

</bundles_post_ra>
